<compile_context>
chip_gen: v6e
topology: v6e:2x2x1
jax: 0.10.0
libtpu: 0.0.40
codegen_flags: <defaults>
</compile_context>

<pallas_src>
import functools
import math

import jax
import jax.numpy as jnp
import numpy as np
from jax.experimental import pallas as pl
from jax.experimental.pallas import tpu as pltpu

EPS = 1e-5  # nn.LayerNorm default eps


def _round_up(v, m):
    return ((v + m - 1) // m) * m


# ------------------------------ Pallas kernel --------------------------------
def spt_fused_kernel(y_ref, m_ref, w_ref, c_ref, o_ref, *, h, w, inv_patch_dim):
    """Streamed PatchShifting + patch rearrange + LayerNorm + Linear.

    y_ref: (bb, h+1, w+1, F)  patch-major padded image, F = p*p*D
    m_ref: (4, F)             per-(quadrant, feature) multiplicities (LN stats)
    w_ref: (4, F, dim_pad)    gamma-folded, K-collapsed weight (per quadrant)
    c_ref: (1, dim_pad)       beta @ W + bias
    o_ref: (bb, h*w, dim_pad)
    """
    bb = y_ref.shape[0]
    F = y_ref.shape[3]
    rows = bb * h * w
    dim_pad = o_ref.shape[-1]

    def quad(qi):
        # Window quadrant (rb, cb): the (p,p,D) block of y at (hi+rb, wi+cb).
        rb, cb = qi // 2, qi % 2
        q = y_ref[:, rb:rb + h, cb:cb + w, :]                  # (bb, h, w, F)
        return q.reshape(rows, F).astype(jnp.float32)

    # Pass 1: multiplicity-weighted mean over the original patch_dim (5*p*p*D).
    ssum = jnp.zeros((rows, 1), jnp.float32)
    for qi in range(4):
        mq = m_ref[qi:qi + 1, :].astype(jnp.float32)           # (1, F)
        ssum = ssum + jnp.sum(quad(qi) * mq, axis=-1, keepdims=True)
    mu = ssum * inv_patch_dim

    # Pass 2: centered second moment (two-pass -> no cancellation) + MXU dots.
    vsum = jnp.zeros((rows, 1), jnp.float32)
    acc = jnp.zeros((rows, dim_pad), jnp.float32)
    for qi in range(4):
        mq = m_ref[qi:qi + 1, :].astype(jnp.float32)
        cen = quad(qi) - mu                                    # (rows, F)
        vsum = vsum + jnp.sum(cen * cen * mq, axis=-1, keepdims=True)
        # Duplicate weight rows are already summed into w_ref -> no m factor here.
        acc = acc + jnp.dot(cen.astype(w_ref.dtype), w_ref[qi],
                            preferred_element_type=jnp.float32)

    inv_std = jax.lax.rsqrt(vsum * inv_patch_dim + EPS)        # EUP slot
    out = acc * inv_std + c_ref[...].astype(jnp.float32)       # (rows, dim_pad)
    o_ref[...] = out.reshape(bb, h * w, dim_pad).astype(o_ref.dtype)


# ------------------------------ wrapper helpers -------------------------------
def _collapse_k_map(p, s, D):
    """Original K index (p1, p2, shift, d) -> collapsed (quad, q1, q2, d) index.

    Original feature ordering (Rearrange 'b c (h p1) (w p2) -> b (h w) (p1 p2 c)'
    with c = concat([x, lu, ru, lb, rb], channel)):
        k = p1*(p*5*D) + p2*(5*D) + shift*D + d
    Collapsed ordering (what the kernel assembles):
        j = (2*rb + cb)*(p*p*D) + (q1*p + q2)*D + d
    with r = p1 + oy[shift], c = p2 + ox[shift], rb = r//p, q1 = r%p, ...
    """
    C = 5 * D
    P = p * p * C
    F = p * p * D
    offs = np.array([(s, s), (0, 0), (0, 2 * s), (2 * s, 0), (2 * s, 2 * s)])
    k = np.arange(P)
    p1 = k // (p * C)
    p2 = (k // C) % p
    shift = (k // D) % 5
    d = k % D
    r = p1 + offs[shift, 0]
    c = p2 + offs[shift, 1]
    j = (2 * (r // p) + (c // p)) * F + ((r % p) * p + (c % p)) * D + d
    return j, 4 * F


def _prepare_params(gamma, beta, W, bias, p, s, D, dim_pad):
    """Fold LN affine into the Linear and permute/collapse its rows to the
    kernel's K ordering.  Exact: per-row LN scalars commute with @W, and
    duplicated features contribute Sum_k Wg_k to the collapsed row."""
    dim = W.shape[1]
    F = p * p * D
    Wg = gamma.astype(jnp.float32)[:, None] * W.astype(jnp.float32)       # (P, dim)
    cvec = beta.astype(jnp.float32) @ W.astype(jnp.float32) + bias.astype(jnp.float32)
    j, Kc = _collapse_k_map(p, s, D)
    Wgc = jnp.zeros((Kc, dim), jnp.float32).at[j].add(Wg)
    mvec = jnp.zeros((Kc,), jnp.float32).at[j].add(1.0)        # multiplicities
    Wgc = jnp.pad(Wgc, ((0, 0), (0, dim_pad - dim))).reshape(4, F, dim_pad)
    cvec = jnp.pad(cvec, (0, dim_pad - dim)).reshape(1, dim_pad)
    return Wgc, cvec, mvec.reshape(4, F)


def _patch_major_padded(x, H, Wimg, p, s):
    """Input-sized producer: y[b, hb, wb, (q1 q2 d)] = pad(x)[b, hb*p+q1, wb*p+q2, d]."""
    B, _, D = x.shape
    h, w = H // p, Wimg // p
    xi = x.reshape(B, H, Wimg, D)
    xp = jnp.pad(xi, ((0, 0), (s, s), (s, s), (0, 0)))         # (B,(h+1)p,(w+1)p,D)
    y = xp.reshape(B, h + 1, p, w + 1, p, D)
    y = jnp.transpose(y, (0, 1, 3, 2, 4, 5))                    # (B,h+1,w+1,p,p,D)
    return y.reshape(B, h + 1, w + 1, p * p * D)


def _pick_images_per_step(B, T, target_rows):
    """Largest divisor of B with <= target_rows token rows per step, keeping
    >= 2 grid steps whenever B >= 2 (so both v7x TensorCores get work)."""
    best = 1
    for bb in range(1, B + 1):
        if B % bb:
            continue
        if B >= 2 and B // bb < 2:
            continue
        if bb * T <= target_rows:
            best = bb
    return best


def _vmem_block_bytes(shape, itemsize):
    """Rough (8,128)-tiled VMEM footprint of one pipeline buffer."""
    if len(shape) < 2:
        return _round_up(max(math.prod(shape), 1), 128) * itemsize
    lead = math.prod(shape[:-2])
    return lead * _round_up(shape[-2], 8) * _round_up(shape[-1], 128) * itemsize


# --------------------------------- entry point --------------------------------
def shifted_patch_tokenization(x, gamma, beta, W, bias, merging_size=2,
                               use_bf16=False, target_rows=512):
    """x: (B, N, D) with N = H*W.  Returns (B, (H/p)*(W/p), dim)."""
    B, N, D = x.shape
    H = Wimg = int(round(math.sqrt(N)))
    assert H * Wimg == N, "token grid must be square (N = H*W)"
    p = merging_size
    s = int(p * 0.5)
    assert p % 2 == 0 and 2 * s == p, "kernel assumes even merging_size (2*shift == p)"
    assert H % p == 0 and Wimg % p == 0
    h, w = H // p, Wimg // p
    T = h * w
    P = D * 5 * p * p                      # true patch_dim (LayerNorm normalizer)
    dim = W.shape[1]
    dim_pad = _round_up(dim, 128)          # lane-dense (unmasked) output stores
    F = p * p * D
    Kc = 4 * F

    y = _patch_major_padded(x, H, Wimg, p, s)                  # (B, h+1, w+1, F)
    Wgc, cvec, mvec = _prepare_params(gamma, beta, W, bias, p, s, D, dim_pad)
    if use_bf16:
        # Halves the (already input-sized) image + weight HBM reads; LN stats
        # and the accumulate stay f32 (tolerance loosens to ~1e-2).
        y = y.astype(jnp.bfloat16)
        Wgc = Wgc.astype(jnp.bfloat16)

    bb = _pick_images_per_step(B, T, target_rows)
    steps = B // bb

    kernel = functools.partial(spt_fused_kernel, h=h, w=w, inv_patch_dim=1.0 / P)

    # Footprint-derived VMEM limit (double-buffer everything, conservatively),
    # capped at 48 MiB to leave headroom on v7x (64 MiB physical per TC).
    est = (2 * _vmem_block_bytes((bb, h + 1, w + 1, F), y.dtype.itemsize)
           + 2 * _vmem_block_bytes((bb, T, dim_pad), x.dtype.itemsize)
           + 2 * _vmem_block_bytes((4, F, dim_pad), Wgc.dtype.itemsize)
           + 2 * _vmem_block_bytes((4, F), 4)
           + 2 * _vmem_block_bytes((1, dim_pad), 4))
    vmem_limit = int(min(48 * 2 ** 20, max(32 * 2 ** 20, 2 * est)))

    out = pl.pallas_call(
        kernel,
        out_shape=jax.ShapeDtypeStruct((B, T, dim_pad), x.dtype),
        grid_spec=pltpu.PrefetchScalarGridSpec(
            num_scalar_prefetch=0,
            grid=(steps,),
            in_specs=[
                pl.BlockSpec((bb, h + 1, w + 1, F), lambda i: (i, 0, 0, 0)),  # image
                pl.BlockSpec((4, F), lambda i: (0, 0)),                        # multiplicities
                pl.BlockSpec((4, F, dim_pad), lambda i: (0, 0, 0)),            # folded weight
                pl.BlockSpec((1, dim_pad), lambda i: (0, 0)),                  # folded bias
            ],
            out_specs=pl.BlockSpec((bb, T, dim_pad), lambda i: (i, 0, 0)),
        ),
        compiler_params=pltpu.CompilerParams(
            dimension_semantics=("parallel",),   # independent images -> megacore
            vmem_limit_bytes=vmem_limit,
        ),
    )(y, mvec, Wgc, cvec)

    return out[:, :, :dim]   # dim_pad -> dim (no-op copy when dim % 128 == 0)


# --------------------------------- reference ----------------------------------
def reference_forward(x, gamma, beta, W, bias, merging_size=2):
    """Literal port of the PyTorch module (pad/crops/concat/rearrange/LN/Linear)."""
    B, N, D = x.shape
    H = Wimg = int(round(math.sqrt(N)))
    p = merging_size
    s = int(p * 0.5)
    x_nchw = jnp.transpose(x.reshape(B, H, Wimg, D), (0, 3, 1, 2))
    xpad = jnp.pad(x_nchw, ((0, 0), (0, 0), (s, s), (s, s)))
    x_lu = xpad[:, :, :-2 * s, :-2 * s]
    x_ru = xpad[:, :, :-2 * s, 2 * s:]
    x_lb = xpad[:, :, 2 * s:, :-2 * s]
    x_rb = xpad[:, :, 2 * s:, 2 * s:]
    x_cat = jnp.concatenate([x_nchw, x_lu, x_ru, x_lb, x_rb], axis=1)   # (B, 5D, H, W)
    C = x_cat.shape[1]
    h, w_ = H // p, Wimg // p
    t = x_cat.reshape(B, C, h, p, w_, p)
    t = jnp.transpose(t, (0, 2, 4, 3, 5, 1)).reshape(B, h * w_, p * p * C)
    mean = jnp.mean(t, axis=-1, keepdims=True)
    var = jnp.mean((t - mean) ** 2, axis=-1, keepdims=True)
    ln = (t - mean) / jnp.sqrt(var + EPS) * gamma + beta
    return ln @ W + bias


# ----------------------------------- main --------------------------------------
if __name__ == "__main__":
    B, in_dim, H, W = 2, 4, 16, 16
    merging_size = 2
    dim = 32
    N = H * W
    patch_dim = in_dim * 5 * merging_size ** 2  # 80

    key = jax.random.PRNGKey(0)
    kx, kg, kb, kw, kbias = jax.random.split(key, 5)

    x = jax.random.normal(kx, (B, N, in_dim), dtype=jnp.float32)
    # Deterministic, non-trivial parameter init (synthetic; no checkpoint load).
    gamma = 1.0 + 0.1 * jax.random.normal(kg, (patch_dim,), dtype=jnp.float32)
    beta = 0.1 * jax.random.normal(kb, (patch_dim,), dtype=jnp.float32)
    w_lin = jax.random.normal(kw, (patch_dim, dim), dtype=jnp.float32) / math.sqrt(patch_dim)
    bias = 0.1 * jax.random.normal(kbias, (dim,), dtype=jnp.float32)

    fwd = jax.jit(functools.partial(shifted_patch_tokenization,
                                    merging_size=merging_size))
    out = jax.block_until_ready(fwd(x, gamma, beta, w_lin, bias))

    ref = reference_forward(x, gamma, beta, w_lin, bias, merging_size=merging_size)
    np.testing.assert_allclose(np.asarray(out), np.asarray(ref), rtol=1e-4, atol=1e-4)
    assert out.shape == (B, (H // merging_size) * (W // merging_size), dim)

    print("KERNEL_OK")
</pallas_src>

<mosaic_0001>
module attributes {stable_mosaic.version = 11 : i64} {
  func.func @spt_fused_kernel(%arg0: i32, %arg1: memref<1x9x9x16xf32, #tpu.memory_space<vmem>>, %arg2: memref<4x16xf32, #tpu.memory_space<vmem>>, %arg3: memref<4x16x128xf32, #tpu.memory_space<vmem>>, %arg4: memref<1x128xf32, #tpu.memory_space<vmem>>, %arg5: memref<1x64x128xf32, #tpu.memory_space<vmem>>) attributes {dimension_semantics = [#tpu.dimension_semantics<parallel>], iteration_bounds = array<i64: 2>, scalar_prefetch = 0 : i64, scratch_operands = 0 : i64, tpu.core_type = #tpu.core_type<tc>, window_params = [{transform_indices = @transform_0, window_bounds = array<i64: 1, 9, 9, 16>}, {pipeline_mode = #tpu.pipeline_mode<synchronous>, transform_indices = @transform_1, window_bounds = array<i64: 4, 16>}, {pipeline_mode = #tpu.pipeline_mode<synchronous>, transform_indices = @transform_2, window_bounds = array<i64: 4, 16, 128>}, {pipeline_mode = #tpu.pipeline_mode<synchronous>, transform_indices = @transform_3, window_bounds = array<i64: 1, 128>}, {transform_indices = @transform_4, window_bounds = array<i64: 1, 64, 128>}]} {
    %cst = arith.constant 0.000000e+00 : f32
    %0 = vector.broadcast %cst : f32 to vector<64x1xf32>
    %c0 = arith.constant 0 : index
    %c0_0 = arith.constant 0 : index
    %1 = vector.load %arg2[%c0, %c0_0] : memref<4x16xf32, #tpu.memory_space<vmem>>, vector<1x16xf32>
    %c0_1 = arith.constant 0 : index
    %c0_2 = arith.constant 0 : index
    %c0_3 = arith.constant 0 : index
    %c0_4 = arith.constant 0 : index
    %2 = vector.load %arg1[%c0_1, %c0_2, %c0_3, %c0_4] : memref<1x9x9x16xf32, #tpu.memory_space<vmem>>, vector<1x8x8x16xf32>
    %3 = vector.shape_cast %2 : vector<1x8x8x16xf32> to vector<64x16xf32>
    %4 = vector.broadcast %1 : vector<1x16xf32> to vector<64x16xf32>
    %5 = arith.mulf %3, %4 : vector<64x16xf32>
    %cst_5 = arith.constant dense<0.000000e+00> : vector<64xf32>
    %6 = vector.multi_reduction <add>, %5, %cst_5 [1] : vector<64x16xf32> to vector<64xf32>
    %7 = vector.shape_cast %6 : vector<64xf32> to vector<64x1xf32>
    %8 = arith.addf %0, %7 : vector<64x1xf32>
    %c1 = arith.constant 1 : index
    %c0_6 = arith.constant 0 : index
    %9 = vector.load %arg2[%c1, %c0_6] : memref<4x16xf32, #tpu.memory_space<vmem>>, vector<1x16xf32>
    %c0_7 = arith.constant 0 : index
    %c0_8 = arith.constant 0 : index
    %c1_9 = arith.constant 1 : index
    %c0_10 = arith.constant 0 : index
    %10 = vector.load %arg1[%c0_7, %c0_8, %c1_9, %c0_10] : memref<1x9x9x16xf32, #tpu.memory_space<vmem>>, vector<1x8x8x16xf32>
    %11 = vector.shape_cast %10 : vector<1x8x8x16xf32> to vector<64x16xf32>
    %12 = vector.broadcast %9 : vector<1x16xf32> to vector<64x16xf32>
    %13 = arith.mulf %11, %12 : vector<64x16xf32>
    %cst_11 = arith.constant dense<0.000000e+00> : vector<64xf32>
    %14 = vector.multi_reduction <add>, %13, %cst_11 [1] : vector<64x16xf32> to vector<64xf32>
    %15 = vector.shape_cast %14 : vector<64xf32> to vector<64x1xf32>
    %16 = arith.addf %8, %15 : vector<64x1xf32>
    %c2 = arith.constant 2 : index
    %c0_12 = arith.constant 0 : index
    %17 = vector.load %arg2[%c2, %c0_12] : memref<4x16xf32, #tpu.memory_space<vmem>>, vector<1x16xf32>
    %c0_13 = arith.constant 0 : index
    %c1_14 = arith.constant 1 : index
    %c0_15 = arith.constant 0 : index
    %c0_16 = arith.constant 0 : index
    %18 = vector.load %arg1[%c0_13, %c1_14, %c0_15, %c0_16] : memref<1x9x9x16xf32, #tpu.memory_space<vmem>>, vector<1x8x8x16xf32>
    %19 = vector.shape_cast %18 : vector<1x8x8x16xf32> to vector<64x16xf32>
    %20 = vector.broadcast %17 : vector<1x16xf32> to vector<64x16xf32>
    %21 = arith.mulf %19, %20 : vector<64x16xf32>
    %cst_17 = arith.constant dense<0.000000e+00> : vector<64xf32>
    %22 = vector.multi_reduction <add>, %21, %cst_17 [1] : vector<64x16xf32> to vector<64xf32>
    %23 = vector.shape_cast %22 : vector<64xf32> to vector<64x1xf32>
    %24 = arith.addf %16, %23 : vector<64x1xf32>
    %c3 = arith.constant 3 : index
    %c0_18 = arith.constant 0 : index
    %25 = vector.load %arg2[%c3, %c0_18] : memref<4x16xf32, #tpu.memory_space<vmem>>, vector<1x16xf32>
    %c0_19 = arith.constant 0 : index
    %c1_20 = arith.constant 1 : index
    %c1_21 = arith.constant 1 : index
    %c0_22 = arith.constant 0 : index
    %26 = vector.load %arg1[%c0_19, %c1_20, %c1_21, %c0_22] : memref<1x9x9x16xf32, #tpu.memory_space<vmem>>, vector<1x8x8x16xf32>
    %27 = vector.shape_cast %26 : vector<1x8x8x16xf32> to vector<64x16xf32>
    %28 = vector.broadcast %25 : vector<1x16xf32> to vector<64x16xf32>
    %29 = arith.mulf %27, %28 : vector<64x16xf32>
    %cst_23 = arith.constant dense<0.000000e+00> : vector<64xf32>
    %30 = vector.multi_reduction <add>, %29, %cst_23 [1] : vector<64x16xf32> to vector<64xf32>
    %31 = vector.shape_cast %30 : vector<64xf32> to vector<64x1xf32>
    %32 = arith.addf %24, %31 : vector<64x1xf32>
    %cst_24 = arith.constant 1.250000e-02 : f32
    %33 = vector.broadcast %cst_24 : f32 to vector<64x1xf32>
    %34 = arith.mulf %32, %33 : vector<64x1xf32>
    %cst_25 = arith.constant 0.000000e+00 : f32
    %35 = vector.broadcast %cst_25 : f32 to vector<64x1xf32>
    %cst_26 = arith.constant 0.000000e+00 : f32
    %36 = vector.broadcast %cst_26 : f32 to vector<64x128xf32>
    %c0_27 = arith.constant 0 : index
    %c0_28 = arith.constant 0 : index
    %37 = vector.load %arg2[%c0_27, %c0_28] : memref<4x16xf32, #tpu.memory_space<vmem>>, vector<1x16xf32>
    %c0_29 = arith.constant 0 : index
    %c0_30 = arith.constant 0 : index
    %c0_31 = arith.constant 0 : index
    %c0_32 = arith.constant 0 : index
    %38 = vector.load %arg1[%c0_29, %c0_30, %c0_31, %c0_32] : memref<1x9x9x16xf32, #tpu.memory_space<vmem>>, vector<1x8x8x16xf32>
    %39 = vector.shape_cast %38 : vector<1x8x8x16xf32> to vector<64x16xf32>
    %40 = vector.broadcast %34 : vector<64x1xf32> to vector<64x16xf32>
    %41 = arith.subf %39, %40 : vector<64x16xf32>
    %42 = arith.mulf %41, %41 : vector<64x16xf32>
    %43 = vector.broadcast %37 : vector<1x16xf32> to vector<64x16xf32>
    %44 = arith.mulf %42, %43 : vector<64x16xf32>
    %cst_33 = arith.constant dense<0.000000e+00> : vector<64xf32>
    %45 = vector.multi_reduction <add>, %44, %cst_33 [1] : vector<64x16xf32> to vector<64xf32>
    %46 = vector.shape_cast %45 : vector<64xf32> to vector<64x1xf32>
    %47 = arith.addf %35, %46 : vector<64x1xf32>
    %c0_34 = arith.constant 0 : index
    %c0_35 = arith.constant 0 : index
    %c0_36 = arith.constant 0 : index
    %48 = vector.load %arg3[%c0_34, %c0_35, %c0_36] : memref<4x16x128xf32, #tpu.memory_space<vmem>>, vector<1x16x128xf32>
    %49 = vector.shape_cast %48 : vector<1x16x128xf32> to vector<16x128xf32>
    %cst_37 = arith.constant dense<0.000000e+00> : vector<64x128xf32>
    %50 = tpu.matmul %41, %49, %cst_37 {dimension_numbers = #tpu.dot_dimension_numbers<[1], [0], [0], [1], [0, 0, 1, 1], [], []>} : vector<64x16xf32>, vector<16x128xf32>, vector<64x128xf32> -> vector<64x128xf32>
    %51 = arith.addf %36, %50 : vector<64x128xf32>
    %c1_38 = arith.constant 1 : index
    %c0_39 = arith.constant 0 : index
    %52 = vector.load %arg2[%c1_38, %c0_39] : memref<4x16xf32, #tpu.memory_space<vmem>>, vector<1x16xf32>
    %c0_40 = arith.constant 0 : index
    %c0_41 = arith.constant 0 : index
    %c1_42 = arith.constant 1 : index
    %c0_43 = arith.constant 0 : index
    %53 = vector.load %arg1[%c0_40, %c0_41, %c1_42, %c0_43] : memref<1x9x9x16xf32, #tpu.memory_space<vmem>>, vector<1x8x8x16xf32>
    %54 = vector.shape_cast %53 : vector<1x8x8x16xf32> to vector<64x16xf32>
    %55 = vector.broadcast %34 : vector<64x1xf32> to vector<64x16xf32>
    %56 = arith.subf %54, %55 : vector<64x16xf32>
    %57 = arith.mulf %56, %56 : vector<64x16xf32>
    %58 = vector.broadcast %52 : vector<1x16xf32> to vector<64x16xf32>
    %59 = arith.mulf %57, %58 : vector<64x16xf32>
    %cst_44 = arith.constant dense<0.000000e+00> : vector<64xf32>
    %60 = vector.multi_reduction <add>, %59, %cst_44 [1] : vector<64x16xf32> to vector<64xf32>
    %61 = vector.shape_cast %60 : vector<64xf32> to vector<64x1xf32>
    %62 = arith.addf %47, %61 : vector<64x1xf32>
    %c1_45 = arith.constant 1 : index
    %c0_46 = arith.constant 0 : index
    %c0_47 = arith.constant 0 : index
    %63 = vector.load %arg3[%c1_45, %c0_46, %c0_47] : memref<4x16x128xf32, #tpu.memory_space<vmem>>, vector<1x16x128xf32>
    %64 = vector.shape_cast %63 : vector<1x16x128xf32> to vector<16x128xf32>
    %cst_48 = arith.constant dense<0.000000e+00> : vector<64x128xf32>
    %65 = tpu.matmul %56, %64, %cst_48 {dimension_numbers = #tpu.dot_dimension_numbers<[1], [0], [0], [1], [0, 0, 1, 1], [], []>} : vector<64x16xf32>, vector<16x128xf32>, vector<64x128xf32> -> vector<64x128xf32>
    %66 = arith.addf %51, %65 : vector<64x128xf32>
    %c2_49 = arith.constant 2 : index
    %c0_50 = arith.constant 0 : index
    %67 = vector.load %arg2[%c2_49, %c0_50] : memref<4x16xf32, #tpu.memory_space<vmem>>, vector<1x16xf32>
    %c0_51 = arith.constant 0 : index
    %c1_52 = arith.constant 1 : index
    %c0_53 = arith.constant 0 : index
    %c0_54 = arith.constant 0 : index
    %68 = vector.load %arg1[%c0_51, %c1_52, %c0_53, %c0_54] : memref<1x9x9x16xf32, #tpu.memory_space<vmem>>, vector<1x8x8x16xf32>
    %69 = vector.shape_cast %68 : vector<1x8x8x16xf32> to vector<64x16xf32>
    %70 = vector.broadcast %34 : vector<64x1xf32> to vector<64x16xf32>
    %71 = arith.subf %69, %70 : vector<64x16xf32>
    %72 = arith.mulf %71, %71 : vector<64x16xf32>
    %73 = vector.broadcast %67 : vector<1x16xf32> to vector<64x16xf32>
    %74 = arith.mulf %72, %73 : vector<64x16xf32>
    %cst_55 = arith.constant dense<0.000000e+00> : vector<64xf32>
    %75 = vector.multi_reduction <add>, %74, %cst_55 [1] : vector<64x16xf32> to vector<64xf32>
    %76 = vector.shape_cast %75 : vector<64xf32> to vector<64x1xf32>
    %77 = arith.addf %62, %76 : vector<64x1xf32>
    %c2_56 = arith.constant 2 : index
    %c0_57 = arith.constant 0 : index
    %c0_58 = arith.constant 0 : index
    %78 = vector.load %arg3[%c2_56, %c0_57, %c0_58] : memref<4x16x128xf32, #tpu.memory_space<vmem>>, vector<1x16x128xf32>
    %79 = vector.shape_cast %78 : vector<1x16x128xf32> to vector<16x128xf32>
    %cst_59 = arith.constant dense<0.000000e+00> : vector<64x128xf32>
    %80 = tpu.matmul %71, %79, %cst_59 {dimension_numbers = #tpu.dot_dimension_numbers<[1], [0], [0], [1], [0, 0, 1, 1], [], []>} : vector<64x16xf32>, vector<16x128xf32>, vector<64x128xf32> -> vector<64x128xf32>
    %81 = arith.addf %66, %80 : vector<64x128xf32>
    %c3_60 = arith.constant 3 : index
    %c0_61 = arith.constant 0 : index
    %82 = vector.load %arg2[%c3_60, %c0_61] : memref<4x16xf32, #tpu.memory_space<vmem>>, vector<1x16xf32>
    %c0_62 = arith.constant 0 : index
    %c1_63 = arith.constant 1 : index
    %c1_64 = arith.constant 1 : index
    %c0_65 = arith.constant 0 : index
    %83 = vector.load %arg1[%c0_62, %c1_63, %c1_64, %c0_65] : memref<1x9x9x16xf32, #tpu.memory_space<vmem>>, vector<1x8x8x16xf32>
    %84 = vector.shape_cast %83 : vector<1x8x8x16xf32> to vector<64x16xf32>
    %85 = vector.broadcast %34 : vector<64x1xf32> to vector<64x16xf32>
    %86 = arith.subf %84, %85 : vector<64x16xf32>
    %87 = arith.mulf %86, %86 : vector<64x16xf32>
    %88 = vector.broadcast %82 : vector<1x16xf32> to vector<64x16xf32>
    %89 = arith.mulf %87, %88 : vector<64x16xf32>
    %cst_66 = arith.constant dense<0.000000e+00> : vector<64xf32>
    %90 = vector.multi_reduction <add>, %89, %cst_66 [1] : vector<64x16xf32> to vector<64xf32>
    %91 = vector.shape_cast %90 : vector<64xf32> to vector<64x1xf32>
    %92 = arith.addf %77, %91 : vector<64x1xf32>
    %c3_67 = arith.constant 3 : index
    %c0_68 = arith.constant 0 : index
    %c0_69 = arith.constant 0 : index
    %93 = vector.load %arg3[%c3_67, %c0_68, %c0_69] : memref<4x16x128xf32, #tpu.memory_space<vmem>>, vector<1x16x128xf32>
    %94 = vector.shape_cast %93 : vector<1x16x128xf32> to vector<16x128xf32>
    %cst_70 = arith.constant dense<0.000000e+00> : vector<64x128xf32>
    %95 = tpu.matmul %86, %94, %cst_70 {dimension_numbers = #tpu.dot_dimension_numbers<[1], [0], [0], [1], [0, 0, 1, 1], [], []>} : vector<64x16xf32>, vector<16x128xf32>, vector<64x128xf32> -> vector<64x128xf32>
    %96 = arith.addf %81, %95 : vector<64x128xf32>
    %cst_71 = arith.constant 1.250000e-02 : f32
    %97 = vector.broadcast %cst_71 : f32 to vector<64x1xf32>
    %98 = arith.mulf %92, %97 : vector<64x1xf32>
    %cst_72 = arith.constant 9.99999974E-6 : f32
    %99 = vector.broadcast %cst_72 : f32 to vector<64x1xf32>
    %100 = arith.addf %98, %99 : vector<64x1xf32>
    %101 = math.rsqrt %100 : vector<64x1xf32>
    %102 = vector.broadcast %101 : vector<64x1xf32> to vector<64x128xf32>
    %103 = arith.mulf %96, %102 : vector<64x128xf32>
    %c0_73 = arith.constant 0 : index
    %c0_74 = arith.constant 0 : index
    %104 = vector.load %arg4[%c0_73, %c0_74] : memref<1x128xf32, #tpu.memory_space<vmem>>, vector<1x128xf32>
    %105 = vector.broadcast %104 : vector<1x128xf32> to vector<64x128xf32>
    %106 = arith.addf %103, %105 : vector<64x128xf32>
    %107 = vector.shape_cast %106 : vector<64x128xf32> to vector<1x64x128xf32>
    %c0_75 = arith.constant 0 : index
    %c0_76 = arith.constant 0 : index
    %c0_77 = arith.constant 0 : index
    %108 = vector.load %arg5[%c0_75, %c0_76, %c0_77] : memref<1x64x128xf32, #tpu.memory_space<vmem>>, vector<1x64x128xf32>
    tpu.vector_store %arg5[%c0_75, %c0_76, %c0_77], %107 {strides = array<i32>} : memref<1x64x128xf32, #tpu.memory_space<vmem>>, vector<1x64x128xf32>,
    return
  }
  func.func @transform_0(%arg0: i32) -> (i32, i32, i32, i32) {
    %c0_i32 = arith.constant 0 : i32
    %c0_i32_0 = arith.constant 0 : i32
    %c0_i32_1 = arith.constant 0 : i32
    %c0_i32_2 = arith.constant 0 : i32
    return %arg0, %c0_i32, %c0_i32_0, %c0_i32_1 : i32, i32, i32, i32
  }
  func.func @transform_1(%arg0: i32) -> (i32, i32) {
    %c0_i32 = arith.constant 0 : i32
    %c0_i32_0 = arith.constant 0 : i32
    %c0_i32_1 = arith.constant 0 : i32
    return %c0_i32, %c0_i32_0 : i32, i32
  }
  func.func @transform_2(%arg0: i32) -> (i32, i32, i32) {
    %c0_i32 = arith.constant 0 : i32
    %c0_i32_0 = arith.constant 0 : i32
    %c0_i32_1 = arith.constant 0 : i32
    %c0_i32_2 = arith.constant 0 : i32
    return %c0_i32, %c0_i32_0, %c0_i32_1 : i32, i32, i32
  }
  func.func @transform_3(%arg0: i32) -> (i32, i32) {
    %c0_i32 = arith.constant 0 : i32
    %c0_i32_0 = arith.constant 0 : i32
    %c0_i32_1 = arith.constant 0 : i32
    return %c0_i32, %c0_i32_0 : i32, i32
  }
  func.func @transform_4(%arg0: i32) -> (i32, i32, i32) {
    %c0_i32 = arith.constant 0 : i32
    %c0_i32_0 = arith.constant 0 : i32
    %c0_i32_1 = arith.constant 0 : i32
    return %arg0, %c0_i32, %c0_i32_0 : i32, i32, i32
  }
}

</mosaic_0001>

<bundles_post_ra>
// kernel: shifted_patch_tokenization.1
= control target key start
LH: loop header
LB: loop body
LE: loop exit
PB: predicated region body
PF: predicated region fallthrough
CT: control target
= control target key end

     0   :  { %s1529_s15 = smov 0   ;;  %s2009_s0 = inlined_call_operand.vmem [shape: f32[2,9,9,16], index: 0, kind: input, shape index: {}]   ;;  %s2010_s1 = inlined_call_operand.vmem [shape: f32[4,16], index: 1, kind: input, shape index: {}]   ;;  %s2011_s2 = inlined_call_operand.vmem [shape: f32[4,16,128], index: 2, kind: input, shape index: {}]   ;;  %s2012_s3 = inlined_call_operand.vmem [shape: f32[1,128], index: 3, kind: input, shape index: {}]   ;;  %s2013_s4 = inlined_call_operand.vmem [shape: f32[2,64,128], index: 4, kind: output, shape index: {}]  }
   0x1 LB: > { %s1297_s16 = sadd.s32 4294967295, %s1502_s15   ;;  %p1301_p0 = scmp.ge.s32.totalorder %s1502_s15, 1  ;;  %s1502_s15 = sphi %s1529_s15, %s14_s15  }
   0x2   : > { %p162_p1 = scmp.lt.s32.totalorder %s1502_s15, 3 }
   0x4   : > { %p163_p2 = pnand %p1301_p0, %p162_p1 }
   0x5   : > { %p188_p3 = scmp.lt.s32.totalorder (!%p163_p2), %s1297_s16, 1 }
   0x6   : > { %166 = sbr.rel (%p163_p2) target bundleno = 444 (0x1bc), region = 36 }
   0xb   : > { %s2015_s16 = smov (!%p188_p3, %s1297_s16), 1  ;;  %v1543_v0 = vld [vmem:[%s2010_s1] ss:$0 sm:$0xff]  ;;  %v1548_v1 = vld [vmem:[%s2010_s1 + $0x1] ss:$0 sm:$0xff]  ;;  %vm219_vm0 = vcmask 130048  }
   0xc   : > { %s1471_s17 = smul.u32 144, %s2015_s16  ;;  %v1578_v10 = vld [vmem:[%s2010_s1 + $0x2] ss:$0 sm:$0xff]  ;;  %v1606_v24 = vld [vmem:[%s2010_s1 + $0x3] ss:$0 sm:$0xff]  ;;  %v1326_v55 = vld [vmem:[%s2011_s2 + $0x18] sm:$0xff] }
   0xd   : > { %v477_v56 = vld [vmem:[%s2011_s2 + $0x8] sm:$0xff]  ;;  %1407 = vmatprep.subr.mxu0 %v1326_v55  ;;  %v1325_v61 = vld [vmem:[%s2011_s2 + $0x10] sm:$0xff]  ;;  %v476_v62 = vld [vmem:[%s2011_s2] sm:$0xff]  ;;  %s1366_s21 = sshll.u32 %s2015_s16, 6 }
   0xe   : > { %s1553_s24 = scalar_lea.vmem %s2009_s0, %s1471_s17  ;;  %1423 = vmatprep.subr.mxu1 %v477_v56  ;;  %1408 = vmatpush3.msra.mxu0 %v1326_v55  ;;  %s1996_s16 = scalar_lea.vmem %s2013_s4, %s1366_s21 }
   0xf   : > { %v1556_v2 = vld [vmem:[%s1553_s24 + $0x10] sm:$0xff]  ;;  %v1559_v3 = vld [vmem:[%s1553_s24] sm:$0xff]  ;;  %1424 = vmatpush3.msra.mxu1 %v477_v56  ;;  %1409 = vmatprep.subr.mxu0 %v1325_v61 }
  0x10   : > { %v1562_v4 = vld [vmem:[%s1553_s24 + $0x11] sm:$0xff]  ;;  %v212_v5 = vmul.f32 %v1543_v0, %v1556_v2  ;;  %v211_v6 = vmul.f32 %v1543_v0, %v1559_v3  ;;  %v1571_v8 = vld [vmem:[%s1553_s24 + $0x1] sm:$0xff]  ;;  %v319_v17 = vmul.f32 %v1578_v10, %v1556_v2  ;;  %1425 = vmatprep.subr.mxu1 %v476_v62  ;;  %1410 = vmatpush3.msra.mxu0 %v1325_v61 }
  0x11   : > { %v266_v7 = vmul.f32 %v1548_v1, %v1562_v4  ;;  %v265_v9 = vmul.f32 %v1548_v1, %v1571_v8  ;;  %v1581_v11 = vld [vmem:[%s1553_s24 + $0x20] sm:$0xff]  ;;  %v1601_v23 = vld [vmem:[%s1553_s24 + $0x30] sm:$0xff]  ;;  %v372_v28 = vmul.f32 %v1606_v24, %v1562_v4  ;;  %1426 = vmatpush3.msra.mxu1 %v476_v62 }
  0x12   : > { %v223_v12 = vsel %vm219_vm0, %v212_v5, 0.0  ;;  %v220_v13 = vsel %vm219_vm0, %v211_v6, 0.0  ;;  %v320_v16 = vmul.f32 %v1578_v10, %v1581_v11  ;;  %v1592_v18 = vld [vmem:[%s1553_s24 + $0x21] sm:$0xff]  ;;  %v327_v20 = vsel %vm219_vm0, %v319_v17, 0.0  ;;  %v1615_v29 = vld [vmem:[%s1553_s24 + $0x31] sm:$0xff] }
  0x13   : > { %224 = vadd.xlane.f32.xlu1 %v223_v12  ;;  %221 = vadd.xlane.f32.xlu0 %v220_v13  ;;  %v276_v14 = vsel %vm219_vm0, %v266_v7, 0.0  ;;  %v273_v15 = vsel %vm219_vm0, %v265_v9, 0.0  ;;  %v267_v21 = vmul.f32 %v1548_v1, %v1592_v18  ;;  %v213_v22 = vmul.f32 %v1581_v11, %v1543_v0  ;;  %v1624_v34 = vld [vmem:[%s1553_s24 + $0x40] sm:$0xff]  ;;  %v1642_v44 = vld [vmem:[%s1553_s24 + $0x50] sm:$0xff] }
  0x14   : > { %v330_v19 = vsel %vm219_vm0, %v320_v16, 0.0  ;;  %v214_v27 = vmul.f32 %v1543_v0, %v1601_v23  ;;  %v380_v31 = vsel %vm219_vm0, %v372_v28, 0.0  ;;  %v373_v32 = vmul.f32 %v1606_v24, %v1592_v18  ;;  %v1633_v39 = vld [vmem:[%s1553_s24 + $0x41] sm:$0xff]  ;;  %v1651_v49 = vld [vmem:[%s1553_s24 + $0x51] sm:$0xff] }
  0x15   : > { %v279_v25 = vsel %vm219_vm0, %v267_v21, 0.0  ;;  %v226_v26 = vsel %vm219_vm0, %v213_v22, 0.0  ;;  %v268_v33 = vmul.f32 %v1548_v1, %v1615_v29  ;;  %v322_v37 = vmul.f32 %v1578_v10, %v1624_v34  ;;  %v1660_v54 = vld [vmem:[%s1553_s24 + $0x60] sm:$0xff]  ;;  %v1690_v12 = vld [vmem:[%s1553_s24 + $0x70] sm:$0xff] }
  0x16   : > { %v229_v30 = vsel %vm219_vm0, %v214_v27, 0.0  ;;  %v383_v35 = vsel %vm219_vm0, %v373_v32, 0.0  ;;  %v321_v38 = vmul.f32 %v1578_v10, %v1601_v23  ;;  %v269_v42 = vmul.f32 %v1548_v1, %v1633_v39  ;;  %v1681_v63 = vld [vmem:[%s1553_s24 + $0x61] sm:$0xff]  ;;  %v1699_v17 = vld [vmem:[%s1553_s24 + $0x71] sm:$0xff] }
  0x17   : > { %277 = vadd.xlane.f32.xlu1 %v276_v14  ;;  %274 = vadd.xlane.f32.xlu0 %v273_v15  ;;  %v282_v36 = vsel %vm219_vm0, %v268_v33, 0.0  ;;  %v336_v40 = vsel %vm219_vm0, %v322_v37, 0.0  ;;  %v215_v43 = vmul.f32 %v1624_v34, %v1543_v0  ;;  %v216_v47 = vmul.f32 %v1543_v0, %v1642_v44 }
  0x18   : > { %v333_v41 = vsel %vm219_vm0, %v321_v38, 0.0  ;;  %v285_v45 = vsel %vm219_vm0, %v269_v42, 0.0  ;;  %v374_v48 = vmul.f32 %v1606_v24, %v1615_v29  ;;  %v375_v52 = vmul.f32 %v1606_v24, %v1633_v39 }
  0x19   : > { %v232_v46 = vsel %vm219_vm0, %v215_v43, 0.0  ;;  %v235_v50 = vsel %vm219_vm0, %v216_v47, 0.0  ;;  %v270_v53 = vmul.f32 %v1548_v1, %v1651_v49  ;;  %v324_v59 = vmul.f32 %v1578_v10, %v1660_v54 }
  0x1a   : > { %v386_v51 = vsel %vm219_vm0, %v374_v48, 0.0  ;;  %v389_v57 = vsel %vm219_vm0, %v375_v52, 0.0  ;;  %v323_v60 = vmul.f32 %v1578_v10, %v1642_v44  ;;  %v271_v7 = vmul.f32 %v1548_v1, %v1681_v63 }
  0x1b   : > { %331 = vadd.xlane.f32.xlu1 %v330_v19  ;;  %328 = vadd.xlane.f32.xlu0 %v327_v20  ;;  %v288_v58 = vsel %vm219_vm0, %v270_v53, 0.0  ;;  %v342_v5 = vsel %vm219_vm0, %v324_v59, 0.0  ;;  %v217_v9 = vmul.f32 %v1660_v54, %v1543_v0  ;;  %v218_v15 = vmul.f32 %v1543_v0, %v1690_v12 }
  0x1c   : > { %v339_v6 = vsel %vm219_vm0, %v323_v60, 0.0  ;;  %v291_v13 = vsel %vm219_vm0, %v271_v7, 0.0  ;;  %v376_v16 = vmul.f32 %v1606_v24, %v1651_v49  ;;  %v377_v21 = vmul.f32 %v1606_v24, %v1681_v63 }
  0x1d   : > { %v238_v14 = vsel %vm219_vm0, %v217_v9, 0.0  ;;  %v241_v19 = vsel %vm219_vm0, %v218_v15, 0.0  ;;  %v272_v22 = vmul.f32 %v1548_v1, %v1699_v17 }
  0x1e   : > { %v392_v20 = vsel %vm219_vm0, %v376_v16, 0.0 }
  0x1f   : > { %280 = vadd.xlane.f32.xlu1 %v279_v25  ;;  %227 = vadd.xlane.f32.xlu0 %v226_v26  ;;  %v1708_v25 = vld [vmem:[%s1553_s24 + $0x80] sm:$0xff]  ;;  %v395_v26 = vsel %vm219_vm0, %v377_v21, 0.0  ;;  %v294_v27 = vsel %vm219_vm0, %v272_v22, 0.0 }
  0x20   : > { %v326_v28 = vmul.f32 %v1578_v10, %v1708_v25 }
  0x22   : > { %v348_v32 = vsel %vm219_vm0, %v326_v28, 0.0 }
  0x23   : > { %230 = vadd.xlane.f32.xlu1 %v229_v30  ;;  %381 = vadd.xlane.f32.xlu0 %v380_v31  ;;  %v325_v30 = vmul.f32 %v1578_v10, %v1690_v12  ;;  %v1717_v31 = vld [vmem:[%s1553_s24 + $0x81] sm:$0xff] }
  0x25   : > { %v345_v33 = vsel %vm219_vm0, %v325_v30, 0.0 }
  0x27   : > { %384 = vadd.xlane.f32.xlu1 %v383_v35  ;;  %283 = vadd.xlane.f32.xlu0 %v282_v36  ;;  %v379_v35 = vmul.f32 %v1606_v24, %v1717_v31  ;;  %v378_v36 = vmul.f32 %v1606_v24, %v1699_v17 }
  0x29   : > { %v401_v37 = vsel %vm219_vm0, %v379_v35, 0.0  ;;  %v398_v38 = vsel %vm219_vm0, %v378_v36, 0.0 }
  0x2b   : > { %337 = vadd.xlane.f32.xlu1 %v336_v40  ;;  %334 = vadd.xlane.f32.xlu0 %v333_v41  ;;  %v1344_v40 = vld [vmem:[%s2011_s2 + $0x28] sm:$0xff]  ;;  %v1354_v41 = vld [vmem:[%s2011_s2 + $0x38] sm:$0xff] }
  0x2c   : > { %1439 = vmatprep.subr.mxu0 %v1344_v40  ;;  %1455 = vmatprep.subr.mxu1 %v1354_v41 }
  0x2f   : > { %286 = vadd.xlane.f32.xlu1 %v285_v45  ;;  %233 = vadd.xlane.f32.xlu0 %v232_v46 }
  0x33   : > { %236 = vadd.xlane.f32.xlu1 %v235_v50  ;;  %387 = vadd.xlane.f32.xlu0 %v386_v51 }
  0x37   : > { %390 = vadd.xlane.f32.xlu1 %v389_v57  ;;  %289 = vadd.xlane.f32.xlu0 %v288_v58 }
  0x3b   : > { %343 = vadd.xlane.f32.xlu1 %v342_v5  ;;  %340 = vadd.xlane.f32.xlu0 %v339_v6 }
  0x3f   : > { %292 = vadd.xlane.f32.xlu1 %v291_v13  ;;  %239 = vadd.xlane.f32.xlu0 %v238_v14 }
  0x43   : > { %242 = vadd.xlane.f32.xlu1 %v241_v19  ;;  %393 = vadd.xlane.f32.xlu0 %v392_v20 }
  0x47   : > { %396 = vadd.xlane.f32.xlu1 %v395_v26  ;;  %295 = vadd.xlane.f32.xlu0 %v294_v27  ;;  %v1353_v27 = vld [vmem:[%s2011_s2 + $0x30] sm:$0xff] }
  0x4b   : > { %349 = vadd.xlane.f32.xlu1 %v348_v32  ;;  %346 = vadd.xlane.f32.xlu0 %v345_v33 }
  0x4f   : > { %402 = vadd.xlane.f32.xlu1 %v401_v37  ;;  %399 = vadd.xlane.f32.xlu0 %v398_v38 }
  0x9c   : > { %v225_v42 = vpop.xlane.xlu1 %224  ;;  %v222_v43 = vpop.xlane.xlu0 %221 }
  0xa0   : > { %v278_v45 = vpop.xlane.xlu1 %277  ;;  %v275_v46 = vpop.xlane.xlu0 %274 }
  0xa1   : > { %v297_v52 = vadd.f32 %v275_v46, %v222_v43  ;;  %v298_v57 = vadd.f32 %v278_v45, %v225_v42 }
  0xa4   : > { %v332_v47 = vpop.xlane.xlu1 %331  ;;  %v329_v48 = vpop.xlane.xlu0 %328 }
  0xa5   : > { %v351_v53 = vadd.f32 %v329_v48, %v297_v52  ;;  %v352_v59 = vadd.f32 %v332_v47, %v298_v57 }
  0xa8   : > { %v281_v50 = vpop.xlane.xlu1 %280  ;;  %v228_v51 = vpop.xlane.xlu0 %227 }
  0xa9   : > { %v299_v28 = vadd.f32 %v281_v50, %v228_v51 }
  0xac   : > { %v231_v55 = vpop.xlane.xlu1 %230  ;;  %v382_v56 = vpop.xlane.xlu0 %381 }
  0xad   : > { %v404_v58 = vadd.f32 %v382_v56, %v351_v53 }
  0xaf   : > { %v1733_v60 = vmul.f32 0.0125, %v404_v58 }
  0xb0   : > { %v385_v61 = vpop.xlane.xlu1 %384  ;;  %v284_v62 = vpop.xlane.xlu0 %283 }
  0xb1   : > { %v405_v5 = vadd.f32 %v385_v61, %v352_v59  ;;  %v1737_v6 = vsub.f32 %v1571_v8, %v1733_v60  ;;  %v420_v7 = vsub.f32 %v1559_v3, %v1733_v60  ;;  %v1343_v3 = vld [vmem:[%s2011_s2 + $0x20] sm:$0xff]  ;;  %v300_v37 = vadd.f32 %v284_v62, %v231_v55 }
  0xb3   : > { %v1741_v9 = vmul.f32 0.0125, %v405_v5  ;;  %1411 = vmatprep.mubr.msk.f32.mxu0 %vm219_vm0, %v1737_v6  ;;  %v428_v13 = vmul.f32 %v420_v7, %v420_v7  ;;  %1427 = vmatprep.mubr.msk.f32.mxu1 %vm219_vm0, %v420_v7 }
  0xb4   : > { %v338_v14 = vpop.xlane.xlu1 %337  ;;  %v335_v15 = vpop.xlane.xlu0 %334 }
  0xb5   : > { %v1748_v16 = vsub.f32 %v1562_v4, %v1741_v9  ;;  %v421_v8 = vsub.f32 %v1556_v2, %v1741_v9  ;;  %v436_v19 = vmul.f32 %v1543_v0, %v428_v13  ;;  %v353_v32 = vadd.f32 %v335_v15, %v299_v28 }
  0xb6   : > { %v354_v42 = vadd.f32 %v338_v14, %v300_v37 }
  0xb7   : > { %1412 = vmatmul.mubr.msk.f32.vlgmr.msra.gmra.mxu0 %vm219_vm0, %v1748_v16  ;;  %1428 = vmatmul.mubr.msk.f32.vlgmr.msra.gmra.mxu1 %vm219_vm0, %v421_v8  ;;  %v444_v21 = vsel %vm219_vm0, %v436_v19, 0.0  ;;  %v429_v26 = vmul.f32 %v421_v8, %v421_v8 }
  0xb8   : > { %v287_v20 = vpop.xlane.xlu1 %286  ;;  %v234_v22 = vpop.xlane.xlu0 %233  ;;  %445 = vadd.xlane.f32.xlu0 %v444_v21  ;;  %1440 = vmatpush3.msra.mxu0 %v1344_v40 }
  0xb9   : > { %v437_v30 = vmul.f32 %v1543_v0, %v429_v26  ;;  %1456 = vmatpush3.msra.mxu1 %v1354_v41  ;;  %1441 = vmatprep.subr.mxu0 %v1343_v3  ;;  %v301_v62 = vadd.f32 %v287_v20, %v234_v22 }
  0xba   : > { %1442 = vmatpush3.msra.mxu0 %v1343_v3  ;;  %1457 = vmatprep.subr.mxu1 %v1353_v27 }
  0xbb   : > { %v447_v33 = vsel %vm219_vm0, %v437_v30, 0.0  ;;  %1458 = vmatpush3.msra.mxu1 %v1353_v27 }
  0xbc   : > { %v237_v35 = vpop.xlane.xlu1 %236  ;;  %v388_v36 = vpop.xlane.xlu0 %387  ;;  %448 = vadd.xlane.f32.xlu1 %v447_v33 }
  0xbd   : > { %v406_v38 = vadd.f32 %v388_v36, %v353_v32 }
  0xbf   : > { %v1765_v43 = vmul.f32 0.0125, %v406_v38 }
  0xc0   : > { %v391_v45 = vpop.xlane.xlu1 %390  ;;  %v290_v40 = vpop.xlane.xlu0 %289 }
  0xc1   : > { %v407_v46 = vadd.f32 %v391_v45, %v354_v42  ;;  %v1769_v41 = vsub.f32 %v1592_v18, %v1765_v43  ;;  %v422_v47 = vsub.f32 %v1581_v11, %v1765_v43  ;;  %v302_v8 = vadd.f32 %v290_v40, %v237_v35 }
  0xc3   : > { %v1773_v48 = vmul.f32 0.0125, %v407_v46  ;;  %1414 = vmatprep.mubr.msk.f32.mxu0 %vm219_vm0, %v1769_v41  ;;  %1430 = vmatprep.mubr.msk.f32.mxu1 %vm219_vm0, %v422_v47  ;;  %v430_v50 = vmul.f32 %v422_v47, %v422_v47 }
  0xc4   : > { %v344_v51 = vpop.xlane.xlu1 %343  ;;  %v341_v52 = vpop.xlane.xlu0 %340 }
  0xc5   : > { %v1780_v53 = vsub.f32 %v1615_v29, %v1773_v48  ;;  %v423_v55 = vsub.f32 %v1601_v23, %v1773_v48  ;;  %v438_v56 = vmul.f32 %v1543_v0, %v430_v50  ;;  %v355_v7 = vadd.f32 %v341_v52, %v301_v62 }
  0xc6   : > { %v356_v3 = vadd.f32 %v344_v51, %v302_v8  ;;  %v1834_v8 = vsub.f32 %v1562_v4, %v1733_v60 }
  0xc7   : > { %1415 = vmatmul.mubr.msk.f32.gmra.mxu0 %vm219_vm0, %v1780_v53  ;;  %1431 = vmatmul.mubr.msk.f32.gmra.mxu1 %vm219_vm0, %v423_v55  ;;  %v431_v57 = vmul.f32 %v423_v55, %v423_v55  ;;  %v450_v59 = vsel %vm219_vm0, %v438_v56, 0.0 }
  0xc8   : > { %v293_v58 = vpop.xlane.xlu1 %292  ;;  %v240_v61 = vpop.xlane.xlu0 %239  ;;  %451 = vadd.xlane.f32.xlu0 %v450_v59 }
  0xc9   : > { %v439_v5 = vmul.f32 %v1543_v0, %v431_v57  ;;  %v303_v36 = vadd.f32 %v293_v58, %v240_v61 }
  0xcb   : > { %v453_v13 = vsel %vm219_vm0, %v439_v5, 0.0 }
  0xcc   : > { %v243_v14 = vpop.xlane.xlu1 %242  ;;  %454 = vadd.xlane.f32.xlu1 %v453_v13  ;;  %v394_v15 = vpop.xlane.xlu0 %393 }
  0xcd   : > { %v408_v19 = vadd.f32 %v394_v15, %v355_v7  ;;  %v1830_v15 = vsub.f32 %v1556_v2, %v1733_v60  ;;  %v796_v60 = vsub.f32 %v1581_v11, %v1741_v9  ;;  %v1865_v11 = vsub.f32 %v1615_v29, %v1765_v43 }
  0xcf   : > { %v1791_v21 = vmul.f32 0.0125, %v408_v19 }
  0xd0   : > { %v397_v26 = vpop.xlane.xlu1 %396  ;;  %v296_v27 = vpop.xlane.xlu0 %295 }
  0xd1   : > { %v409_v28 = vadd.f32 %v397_v26, %v356_v3  ;;  %v1795_v20 = vsub.f32 %v1633_v39, %v1791_v21  ;;  %v424_v22 = vsub.f32 %v1624_v34, %v1791_v21  ;;  %v304_v37 = vadd.f32 %v296_v27, %v243_v14 }
  0xd2   : > { %v486_v14 = vmul.f32 %v1737_v6, %v1737_v6  ;;  %v487_v26 = vmul.f32 %v1748_v16, %v1748_v16  ;;  %v1852_v6 = vsub.f32 %v1592_v18, %v1741_v9  ;;  %v489_v16 = vmul.f32 %v1780_v53, %v1780_v53 }
  0xd3   : > { %v1799_v30 = vmul.f32 0.0125, %v409_v28  ;;  %1417 = vmatprep.mubr.msk.f32.mxu0 %vm219_vm0, %v1795_v20  ;;  %1433 = vmatprep.mubr.msk.f32.mxu1 %vm219_vm0, %v424_v22  ;;  %v432_v32 = vmul.f32 %v424_v22, %v424_v22  ;;  %v488_v18 = vmul.f32 %v1769_v41, %v1769_v41  ;;  %v798_v9 = vsub.f32 %v1624_v34, %v1773_v48 }
  0xd4   : > { %v350_v33 = vpop.xlane.xlu1 %349  ;;  %v347_v35 = vpop.xlane.xlu0 %346  ;;  %v495_v22 = vmul.f32 %v1548_v1, %v487_v26  ;;  %v490_v53 = vmul.f32 %v1795_v20, %v1795_v20  ;;  %v799_v34 = vsub.f32 %v1642_v44, %v1791_v21  ;;  %v1000_v26 = vmul.f32 %v1852_v6, %v1852_v6 }
  0xd5   : > { %v483_v38 = vsub.f32 %v1651_v49, %v1799_v30  ;;  %v425_v42 = vsub.f32 %v1642_v44, %v1799_v30  ;;  %v440_v45 = vmul.f32 %v1543_v0, %v432_v32  ;;  %v358_v40 = vadd.f32 %v350_v33, %v304_v37 }
  0xd6   : > { %v357_v46 = vadd.f32 %v347_v35, %v303_v36  ;;  %v494_v32 = vmul.f32 %v1548_v1, %v486_v14  ;;  %v505_v29 = vsel %vm219_vm0, %v495_v22, 0.0  ;;  %v1890_v35 = vsub.f32 %v1651_v49, %v1791_v21 }
  0xd7   : > { %1418 = vmatmul.mubr.msk.f32.gmra.mxu0 %vm219_vm0, %v483_v38  ;;  %1434 = vmatmul.mubr.msk.f32.gmra.mxu1 %vm219_vm0, %v425_v42  ;;  %v433_v47 = vmul.f32 %v425_v42, %v425_v42  ;;  %v456_v51 = vsel %vm219_vm0, %v440_v45, 0.0  ;;  %v491_v41 = vmul.f32 %v483_v38, %v483_v38  ;;  %v496_v36 = vmul.f32 %v1548_v1, %v488_v18 }
  0xd8   : > { %v403_v50 = vpop.xlane.xlu1 %402  ;;  %v400_v52 = vpop.xlane.xlu0 %399  ;;  %457 = vadd.xlane.f32.xlu0 %v456_v51  ;;  %v502_v33 = vsel %vm219_vm0, %v494_v32, 0.0  ;;  %v800_v44 = vsub.f32 %v1660_v54, %v1799_v30  ;;  %v1903_v49 = vsub.f32 %v1681_v63, %v1799_v30  ;;  %v498_v21 = vmul.f32 %v1548_v1, %v490_v53 }
  0xd9   : > { %v411_v55 = vadd.f32 %v403_v50, %v358_v40  ;;  %v410_v56 = vadd.f32 %v400_v52, %v357_v46  ;;  %v441_v57 = vmul.f32 %v1543_v0, %v433_v47  ;;  %v508_v37 = vsel %vm219_vm0, %v496_v36, 0.0 }
  0xda   : > { %v804_v45 = vmul.f32 %v796_v60, %v796_v60  ;;  %v514_v40 = vsel %vm219_vm0, %v498_v21, 0.0  ;;  %v803_v47 = vmul.f32 %v1830_v15, %v1830_v15  ;;  %v806_v50 = vmul.f32 %v798_v9, %v798_v9 }
  0xdb   : > { %v1813_v58 = vmul.f32 0.0125, %v411_v55  ;;  %v1815_v59 = vmul.f32 0.0125, %v410_v56  ;;  %v459_v61 = vsel %vm219_vm0, %v441_v57, 0.0  ;;  %v808_v57 = vmul.f32 %v800_v44, %v800_v44 }
  0xdc   : > { %460 = vadd.xlane.f32.xlu1 %v459_v61  ;;  %v811_v52 = vmul.f32 %v1578_v10, %v803_v47  ;;  %v814_v56 = vmul.f32 %v1578_v10, %v806_v50  ;;  %v807_v61 = vmul.f32 %v799_v34, %v799_v34  ;;  %v1001_v32 = vmul.f32 %v1865_v11, %v1865_v11 }
  0xdd   : > { %v484_v62 = vsub.f32 %v1681_v63, %v1815_v59  ;;  %v426_v5 = vsub.f32 %v1660_v54, %v1815_v59  ;;  %v485_v7 = vsub.f32 %v1699_v17, %v1813_v58  ;;  %v427_v13 = vsub.f32 %v1690_v12, %v1813_v58 }
  0xde   : > { %v801_v38 = vsub.f32 %v1690_v12, %v1815_v59  ;;  %v1913_v54 = vsub.f32 %v1699_v17, %v1815_v59  ;;  %v802_v63 = vsub.f32 %v1708_v25, %v1813_v58  ;;  %v998_v12 = vsub.f32 %v1717_v31, %v1813_v58 }
  0xdf   : > { %1420 = vmatprep.mubr.msk.f32.mxu0 %vm219_vm0, %v484_v62  ;;  %1436 = vmatprep.mubr.msk.f32.mxu1 %vm219_vm0, %v426_v5  ;;  %v435_v19 = vmul.f32 %v427_v13, %v427_v13  ;;  %v434_v3 = vmul.f32 %v426_v5, %v426_v5  ;;  %v493_v20 = vmul.f32 %v485_v7, %v485_v7  ;;  %v819_v58 = vsel %vm219_vm0, %v811_v52, 0.0 }
  0xe0   : > { %1421 = vmatmul.mubr.msk.f32.gmra.mxu0 %vm219_vm0, %v485_v7  ;;  %1437 = vmatmul.mubr.msk.f32.gmra.mxu1 %vm219_vm0, %v427_v13  ;;  %v492_v42 = vmul.f32 %v484_v62, %v484_v62  ;;  %v812_v31 = vmul.f32 %v1578_v10, %v804_v45  ;;  %v828_v62 = vsel %vm219_vm0, %v814_v56, 0.0  ;;  %v816_v5 = vmul.f32 %v1578_v10, %v808_v57 }
  0xe1   : > { %1443 = vmatprep.mubr.msk.f32.mxu0 %vm219_vm0, %v1830_v15  ;;  %1459 = vmatprep.mubr.msk.f32.mxu1 %vm219_vm0, %v1834_v8  ;;  %v443_v2 = vmul.f32 %v1543_v0, %v435_v19  ;;  %v442_v4 = vmul.f32 %v1543_v0, %v434_v3  ;;  %v797_v0 = vsub.f32 %v1601_v23, %v1765_v43 }
  0xe2   : > { %v497_v23 = vmul.f32 %v1548_v1, %v489_v16  ;;  %v1880_v43 = vsub.f32 %v1633_v39, %v1773_v48  ;;  %v499_v48 = vmul.f32 %v1548_v1, %v491_v41  ;;  %v501_v17 = vmul.f32 %v1548_v1, %v493_v20 }
  0xe3   : > { %v465_v27 = vsel %vm219_vm0, %v443_v2, 0.0  ;;  %v462_v28 = vsel %vm219_vm0, %v442_v4, 0.0  ;;  %v500_v46 = vmul.f32 %v1548_v1, %v492_v42  ;;  %v805_v55 = vmul.f32 %v797_v0, %v797_v0 }
  0xe4   : > { %466 = vadd.xlane.f32.xlu1 %v465_v27  ;;  %1444 = vmatmul.mubr.msk.f32.vlgmr.msra.gmra.mxu0 %vm219_vm0, %v796_v60  ;;  %v511_v39 = vsel %vm219_vm0, %v497_v23, 0.0  ;;  %v517_v30 = vsel %vm219_vm0, %v499_v48, 0.0  ;;  %v523_v25 = vsel %vm219_vm0, %v501_v17, 0.0  ;;  %v822_v1 = vsel %vm219_vm0, %v812_v31, 0.0 }
  0xe5   : > { %1460 = vmatmul.mubr.msk.f32.vlgmr.msra.gmra.mxu1 %vm219_vm0, %v1852_v6  ;;  %463 = vadd.xlane.f32.xlu0 %v462_v28  ;;  %v520_v51 = vsel %vm219_vm0, %v500_v46, 0.0  ;;  %v813_v59 = vmul.f32 %v1578_v10, %v805_v55  ;;  %v810_v7 = vmul.f32 %v802_v63, %v802_v63  ;;  %v815_v14 = vmul.f32 %v1578_v10, %v807_v61 }
  0xe6   : > { %1446 = vmatprep.mubr.msk.f32.mxu0 %vm219_vm0, %v797_v0  ;;  %1462 = vmatprep.mubr.msk.f32.mxu1 %vm219_vm0, %v1865_v11  ;;  %v809_v15 = vmul.f32 %v801_v38, %v801_v38  ;;  %v834_v19 = vsel %vm219_vm0, %v816_v5, 0.0  ;;  %v999_v60 = vmul.f32 %v1834_v8, %v1834_v8  ;;  %v1008_v27 = vmul.f32 %v1606_v24, %v1000_v26 }
  0xe7   : > { %v825_v13 = vsel %vm219_vm0, %v813_v59, 0.0  ;;  %v818_v3 = vmul.f32 %v1578_v10, %v810_v7  ;;  %v831_v2 = vsel %vm219_vm0, %v815_v14, 0.0  ;;  %v1002_v28 = vmul.f32 %v1880_v43, %v1880_v43 }
  0xe8   : > { %506 = vadd.xlane.f32.xlu1 %v505_v29  ;;  %1447 = vmatmul.mubr.msk.f32.gmra.mxu0 %vm219_vm0, %v798_v9  ;;  %v817_v4 = vmul.f32 %v1578_v10, %v809_v15  ;;  %v1007_v6 = vmul.f32 %v1606_v24, %v999_v60  ;;  %v1018_v10 = vsel %vm219_vm0, %v1008_v27, 0.0  ;;  %v1004_v0 = vmul.f32 %v1903_v49, %v1903_v49 }
  0xe9   : > { %1463 = vmatmul.mubr.msk.f32.gmra.mxu1 %vm219_vm0, %v1880_v43  ;;  %503 = vadd.xlane.f32.xlu0 %v502_v33  ;;  %v840_v16 = vsel %vm219_vm0, %v818_v3, 0.0  ;;  %v1010_v8 = vmul.f32 %v1606_v24, %v1002_v28  ;;  %v1009_v9 = vmul.f32 %v1606_v24, %v1001_v32  ;;  %v1003_v23 = vmul.f32 %v1890_v35, %v1890_v35 }
  0xea   : > { %1449 = vmatprep.mubr.msk.f32.mxu0 %vm219_vm0, %v799_v34  ;;  %1465 = vmatprep.mubr.msk.f32.mxu1 %vm219_vm0, %v1890_v35  ;;  %v837_v22 = vsel %vm219_vm0, %v817_v4, 0.0  ;;  %v1015_v18 = vsel %vm219_vm0, %v1007_v6, 0.0  ;;  %v1012_v11 = vmul.f32 %v1606_v24, %v1004_v0  ;;  %v1006_v43 = vmul.f32 %v998_v12, %v998_v12 }
  0xeb   : > { %v1024_v29 = vsel %vm219_vm0, %v1010_v8, 0.0  ;;  %v1021_v41 = vsel %vm219_vm0, %v1009_v9, 0.0  ;;  %v1011_v53 = vmul.f32 %v1606_v24, %v1003_v23  ;;  %v1005_v33 = vmul.f32 %v1913_v54, %v1913_v54 }
  0xec   : > { %512 = vadd.xlane.f32.xlu1 %v511_v39  ;;  %1450 = vmatmul.mubr.msk.f32.gmra.mxu0 %vm219_vm0, %v800_v44  ;;  %v1030_v34 = vsel %vm219_vm0, %v1012_v11, 0.0  ;;  %v1014_v36 = vmul.f32 %v1606_v24, %v1006_v43 }
  0xed   : > { %1466 = vmatmul.mubr.msk.f32.gmra.mxu1 %vm219_vm0, %v1903_v49  ;;  %509 = vadd.xlane.f32.xlu0 %v508_v37  ;;  %v1027_v35 = vsel %vm219_vm0, %v1011_v53, 0.0  ;;  %v1013_v39 = vmul.f32 %v1606_v24, %v1005_v33 }
  0xee   : > { %1452 = vmatprep.mubr.msk.f32.mxu0 %vm219_vm0, %v801_v38  ;;  %1468 = vmatprep.mubr.msk.f32.mxu1 %vm219_vm0, %v1913_v54  ;;  %v1036_v44 = vsel %vm219_vm0, %v1014_v36, 0.0 }
  0xef   : > { %v1033_v49 = vsel %vm219_vm0, %v1013_v39, 0.0 }
  0xf0   : > { %518 = vadd.xlane.f32.xlu1 %v517_v30  ;;  %1453 = vmatmul.mubr.msk.f32.gmra.mxu0 %vm219_vm0, %v802_v63 }
  0xf1   : > { %1469 = vmatmul.mubr.msk.f32.gmra.mxu1 %vm219_vm0, %v998_v12  ;;  %515 = vadd.xlane.f32.xlu0 %v514_v40 }
  0xf4   : > { %524 = vadd.xlane.f32.xlu1 %v523_v25 }
  0xf5   : > { %521 = vadd.xlane.f32.xlu0 %v520_v51 }
  0xf8   : > { %823 = vadd.xlane.f32.xlu1 %v822_v1 }
  0xf9   : > { %820 = vadd.xlane.f32.xlu0 %v819_v58 }
  0xfc   : > { %829 = vadd.xlane.f32.xlu1 %v828_v62 }
  0xfd   : > { %826 = vadd.xlane.f32.xlu0 %v825_v13 }
 0x100   : > { %835 = vadd.xlane.f32.xlu1 %v834_v19 }
 0x101   : > { %832 = vadd.xlane.f32.xlu0 %v831_v2 }
 0x104   : > { %841 = vadd.xlane.f32.xlu1 %v840_v16 }
 0x105   : > { %838 = vadd.xlane.f32.xlu0 %v837_v22 }
 0x108   : > { %1019 = vadd.xlane.f32.xlu1 %v1018_v10 }
 0x109   : > { %1016 = vadd.xlane.f32.xlu0 %v1015_v18 }
 0x10c   : > { %1025 = vadd.xlane.f32.xlu1 %v1024_v29 }
 0x10d   : > { %1022 = vadd.xlane.f32.xlu0 %v1021_v41 }
 0x110   : > { %1031 = vadd.xlane.f32.xlu1 %v1030_v34 }
 0x111   : > { %1028 = vadd.xlane.f32.xlu0 %v1027_v35 }
 0x114   : > { %1037 = vadd.xlane.f32.xlu1 %v1036_v44 }
 0x115   : > { %1034 = vadd.xlane.f32.xlu0 %v1033_v49 }
 0x141   : > { %v446_v21 = vpop.xlane.xlu0 %445 }
 0x145   : > { %v449_v48 = vpop.xlane.xlu1 %448 }
 0x151   : > { %v452_v37 = vpop.xlane.xlu0 %451 }
 0x155   : > { %v455_v20 = vpop.xlane.xlu1 %454 }
 0x161   : > { %v458_v54 = vpop.xlane.xlu0 %457 }
 0x165   : > { %v461_v38 = vpop.xlane.xlu1 %460 }
 0x16d   : > { %v467_v42 = vpop.xlane.xlu1 %466 }
 0x16e   : > { %v464_v63 = vpop.xlane.xlu0 %463 }
 0x171   : > { %v507_v30 = vpop.xlane.xlu1 %506 }
 0x172   : > { %v504_v12 = vpop.xlane.xlu0 %503  ;;  %v527_v56 = vadd.f32 %v507_v30, %v449_v48 }
 0x173   : > { %v526_v61 = vadd.f32 %v504_v12, %v446_v21 }
 0x175   : > { %v513_v17 = vpop.xlane.xlu1 %512 }
 0x176   : > { %v510_v45 = vpop.xlane.xlu0 %509  ;;  %v529_v7 = vadd.f32 %v513_v17, %v455_v20 }
 0x177   : > { %v1980_v57 = vpop.f32.mrf.mxu0  ;;  %v1982_v58 = vpop.f32.mrf.mxu1  ;;  %v528_v26 = vadd.f32 %v510_v45, %v452_v37 }
 0x179   : > { %v519_v24 = vpop.xlane.xlu1 %518  ;;  %v1984_v13 = vpop.f32.mrf.mxu0 }
 0x17a   : > { %v516_v40 = vpop.xlane.xlu0 %515  ;;  %v756_v14 = vpop.f32.mrf.mxu1  ;;  %v531_v22 = vadd.f32 %v519_v24, %v461_v38 }
 0x17b   : > { %v530_v18 = vadd.f32 %v516_v40, %v458_v54 }
 0x17d   : > { %v525_v46 = vpop.xlane.xlu1 %524 }
 0x17e   : > { %v522_v47 = vpop.xlane.xlu0 %521  ;;  %v533_v33 = vadd.f32 %v525_v46, %v467_v42 }
 0x17f   : > { %v532_v21 = vadd.f32 %v522_v47, %v464_v63 }
 0x181   : > { %v824_v25 = vpop.xlane.xlu1 %823 }
 0x182   : > { %v821_v31 = vpop.xlane.xlu0 %820  ;;  %v844_v62 = vadd.f32 %v824_v25, %v527_v56 }
 0x183   : > { %v843_v15 = vadd.f32 %v821_v31, %v526_v61  ;;  %v757_v61 = vadd.f32 %v756_v14, %v1984_v13 }
 0x185   : > { %v830_v50 = vpop.xlane.xlu1 %829 }
 0x186   : > { %v827_v51 = vpop.xlane.xlu0 %826  ;;  %v846_v2 = vadd.f32 %v830_v50, %v529_v7 }
 0x187   : > { %v1416_v4 = vpop.f32.mrf.mxu0  ;;  %v1432_v60 = vpop.f32.mrf.mxu1  ;;  %v845_v6 = vadd.f32 %v827_v51, %v528_v26 }
 0x189   : > { %v836_v52 = vpop.xlane.xlu1 %835  ;;  %v637_v9 = vpop.f32.mrf.mxu0 }
 0x18a   : > { %v833_v55 = vpop.xlane.xlu0 %832  ;;  %v766_v23 = vpop.f32.mrf.mxu1  ;;  %v848_v29 = vadd.f32 %v836_v52, %v531_v22 }
 0x18b   : > { %v847_v34 = vadd.f32 %v833_v55, %v530_v18 }
 0x18d   : > { %v842_v1 = vpop.xlane.xlu1 %841 }
 0x18e   : > { %v839_v59 = vpop.xlane.xlu0 %838  ;;  %v850_v20 = vadd.f32 %v842_v1, %v533_v33  ;;  %v762_v1 = vadd.f32 %v1982_v58, %v1980_v57  ;;  %v1363_v57 = vld [vmem:[%s2012_s3] ss:$0 sm:$0xff] }
 0x18f   : > { %v849_v12 = vadd.f32 %v839_v59, %v532_v21 }
 0x191   : > { %v1020_v5 = vpop.xlane.xlu1 %1019 }
 0x192   : > { %v1040_v19 = vadd.f32 %v1020_v5, %v844_v62  ;;  %v1017_v3 = vpop.xlane.xlu0 %1016 }
 0x193   : > { %v1039_v27 = vadd.f32 %v1017_v3, %v843_v15 }
 0x194   : > { %v1188_v16 = vmul.f32 0.0125, %v1040_v19  ;;  %v772_v19 = vadd.f32 %v1432_v60, %v1416_v4 }
 0x195   : > { %v1026_v28 = vpop.xlane.xlu1 %1025  ;;  %v1187_v32 = vmul.f32 0.0125, %v1039_v27  ;;  %v767_v27 = vadd.f32 %v766_v23, %v637_v9 }
 0x196   : > { %v1042_v10 = vadd.f32 %v1026_v28, %v846_v2  ;;  %v1196_v8 = vadd.f32 1e-05, %v1188_v16  ;;  %v1023_v0 = vpop.xlane.xlu0 %1022 }
 0x197   : > { %v1041_v43 = vadd.f32 %v1023_v0, %v845_v6  ;;  %v1195_v41 = vadd.f32 1e-05, %v1187_v32  ;;  %v1419_v35 = vpop.f32.mrf.mxu0  ;;  %v1435_v39 = vpop.f32.mrf.mxu1 }
 0x198   : > { %v1190_v11 = vmul.f32 0.0125, %v1042_v10  ;;  %1480 = vrsqrt.f32 %v1196_v8  ;;  %v782_v32 = vadd.f32 %v1435_v39, %v1419_v35 }
 0x199   : > { %v1032_v53 = vpop.xlane.xlu1 %1031  ;;  %v1189_v36 = vmul.f32 0.0125, %v1041_v43  ;;  %1482 = vrsqrt.f32 %v1195_v41  ;;  %v647_v17 = vpop.f32.mrf.mxu0 }
 0x19a   : > { %v1044_v44 = vadd.f32 %v1032_v53, %v848_v29  ;;  %v1198_v49 = vadd.f32 1e-05, %v1190_v11  ;;  %v1029_v48 = vpop.xlane.xlu0 %1028  ;;  %v776_v45 = vpop.f32.mrf.mxu1 }
 0x19b   : > { %v1043_v38 = vadd.f32 %v1029_v48, %v847_v34  ;;  %v1197_v54 = vadd.f32 1e-05, %v1189_v36  ;;  %v777_v23 = vadd.f32 %v776_v45, %v647_v17 }
 0x19c   : > { %v1192_v37 = vmul.f32 0.0125, %v1044_v44  ;;  %1484 = vrsqrt.f32 %v1198_v49 }
 0x19d   : > { %v1038_v30 = vpop.xlane.xlu1 %1037  ;;  %v1191_v24 = vmul.f32 0.0125, %v1043_v38  ;;  %1486 = vrsqrt.f32 %v1197_v54 }
 0x19e   : > { %v1046_v42 = vadd.f32 %v1038_v30, %v850_v20  ;;  %v1200_v40 = vadd.f32 1e-05, %v1192_v37  ;;  %v1035_v46 = vpop.xlane.xlu0 %1034 }
 0x19f   : > { %v1045_v31 = vadd.f32 %v1035_v46, %v849_v12  ;;  %v1199_v63 = vadd.f32 1e-05, %v1191_v24 }
 0x1a0   : > { %v1194_v25 = vmul.f32 0.0125, %v1046_v42  ;;  %v1422_v50 = vpop.f32.mrf.mxu0  ;;  %v1438_v51 = vpop.f32.mrf.mxu1  ;;  %1488 = vrsqrt.f32 %v1200_v40 }
 0x1a1   : > { %v1193_v47 = vmul.f32 0.0125, %v1045_v31  ;;  %1490 = vrsqrt.f32 %v1199_v63  ;;  %v792_v36 = vadd.f32 %v1438_v51, %v1422_v50 }
 0x1a2   : > { %v657_v52 = vpop.f32.mrf.mxu0  ;;  %v786_v55 = vpop.f32.mrf.mxu1  ;;  %v1202_v56 = vadd.f32 1e-05, %v1194_v25 }
 0x1a3   : > { %v1201_v62 = vadd.f32 1e-05, %v1193_v47  ;;  %v787_v37 = vadd.f32 %v786_v55, %v657_v52 }
 0x1a4   : > { %v1445_v59 = vpop.f32.mrf.mxu0  ;;  %1492 = vrsqrt.f32 %v1202_v56 }
 0x1a5   : > { %v984_v5 = vadd.f32 %v1445_v59, %v762_v1  ;;  %v1461_v7 = vpop.f32.mrf.mxu1  ;;  %v1481_v16 = vpop.eup %1480  ;;  %1494 = vrsqrt.f32 %v1201_v62 }
 0x1a6   : > { %v944_v15 = vpop.f32.mrf.mxu0  ;;  %v1483_v6 = vpop.eup %1482 }
 0x1a7   : > { %v1180_v3 = vadd.f32 %v1461_v7, %v984_v5  ;;  %v983_v26 = vadd.f32 %v944_v15, %v757_v61  ;;  %v1140_v2 = vpop.f32.mrf.mxu1 }
 0x1a8   : > { %v1448_v58 = vpop.f32.mrf.mxu0 }
 0x1a9   : > { %v1212_v13 = vmul.f32 %v1481_v16, %v1180_v3  ;;  %v1179_v14 = vadd.f32 %v1140_v2, %v983_v26  ;;  %v986_v28 = vadd.f32 %v1448_v58, %v772_v19  ;;  %v1464_v22 = vpop.f32.mrf.mxu1  ;;  %v1485_v9 = vpop.eup %1484 }
 0x1aa   : > { %v954_v4 = vpop.f32.mrf.mxu0  ;;  %v1487_v34 = vpop.eup %1486 }
 0x1ab   : > { %v1227_v60 = vadd.f32 %v1363_v57, %v1212_v13  ;;  %v1211_v10 = vmul.f32 %v1483_v6, %v1179_v14  ;;  %v1182_v8 = vadd.f32 %v1464_v22, %v986_v28  ;;  %v985_v0 = vadd.f32 %v954_v4, %v767_v27  ;;  %v1150_v18 = vpop.f32.mrf.mxu1 }
 0x1ac   : > { %v1451_v29 = vpop.f32.mrf.mxu0 }
 0x1ad   : > { %1235 = vst [vmem:[%s1996_s16 + $0x8] sm:$0xff] %v1227_v60  ;;  %v1226_v11 = vadd.f32 %v1363_v57, %v1211_v10  ;;  %v1214_v43 = vmul.f32 %v1485_v9, %v1182_v8  ;;  %v1181_v41 = vadd.f32 %v1150_v18, %v985_v0  ;;  %v988_v53 = vadd.f32 %v1451_v29, %v782_v32  ;;  %v1467_v33 = vpop.f32.mrf.mxu1  ;;  %v1489_v20 = vpop.eup %1488 }
 0x1ae   : > { %v964_v35 = vpop.f32.mrf.mxu0  ;;  %v1491_v24 = vpop.eup %1490 }
 0x1af   : > { %1234 = vst [vmem:[%s1996_s16] sm:$0xff] %v1226_v11  ;;  %v1229_v39 = vadd.f32 %v1363_v57, %v1214_v43  ;;  %v1213_v44 = vmul.f32 %v1487_v34, %v1181_v41  ;;  %v1184_v49 = vadd.f32 %v1467_v33, %v988_v53  ;;  %v987_v48 = vadd.f32 %v964_v35, %v777_v23  ;;  %v1160_v21 = vpop.f32.mrf.mxu1 }
 0x1b0   : > { %v1454_v38 = vpop.f32.mrf.mxu0 }
 0x1b1   : > { %1237 = vst [vmem:[%s1996_s16 + $0x18] sm:$0xff] %v1229_v39  ;;  %v1228_v54 = vadd.f32 %v1363_v57, %v1213_v44  ;;  %v1216_v30 = vmul.f32 %v1489_v20, %v1184_v49  ;;  %v1183_v12 = vadd.f32 %v1160_v21, %v987_v48  ;;  %v990_v17 = vadd.f32 %v1454_v38, %v792_v36  ;;  %v1470_v45 = vpop.f32.mrf.mxu1  ;;  %v1493_v50 = vpop.eup %1492 }
 0x1b2   : > { %v974_v42 = vpop.f32.mrf.mxu0  ;;  %v1495_v55 = vpop.eup %1494 }
 0x1b3   : > { %1236 = vst [vmem:[%s1996_s16 + $0x10] sm:$0xff] %v1228_v54  ;;  %v1231_v40 = vadd.f32 %v1363_v57, %v1216_v30  ;;  %v1215_v46 = vmul.f32 %v1491_v24, %v1183_v12  ;;  %v1186_v25 = vadd.f32 %v1470_v45, %v990_v17  ;;  %v989_v31 = vadd.f32 %v974_v42, %v787_v37  ;;  %v1170_v51 = vpop.f32.mrf.mxu1 }
 0x1b5   : > { %1239 = vst [vmem:[%s1996_s16 + $0x28] sm:$0xff] %v1231_v40  ;;  %v1230_v63 = vadd.f32 %v1363_v57, %v1215_v46  ;;  %v1218_v47 = vmul.f32 %v1493_v50, %v1186_v25  ;;  %v1185_v52 = vadd.f32 %v1170_v51, %v989_v31 }
 0x1b7   : > { %1238 = vst [vmem:[%s1996_s16 + $0x20] sm:$0xff] %v1230_v63  ;;  %v1233_v1 = vadd.f32 %v1363_v57, %v1218_v47  ;;  %v1217_v56 = vmul.f32 %v1495_v55, %v1185_v52 }
 0x1b9   : > { %1241 = vst [vmem:[%s1996_s16 + $0x38] sm:$0xff] %v1233_v1  ;;  %v1232_v59 = vadd.f32 %v1363_v57, %v1217_v56 }
 0x1bb   : > { %1240 = vst [vmem:[%s1996_s16 + $0x30] sm:$0xff] %v1232_v59 }
 0x1bc PF: > { %s14_s15 = sadd.s32 1, %s1502_s15  }
 0x1bd   : > { %p11_p4 = scmp.ge.s32.totalorder %s14_s15, 4  }
 0x1bf   :  { %13 = sbr.rel (!%p11_p4) target bundleno = 1 (0x1), region = 70 }

</bundles_post_ra>
